<compile_context>
chip_gen: v6e
topology: v6e:2x2x1
jax: 0.10.0
libtpu: 0.0.40
codegen_flags: <defaults>
</compile_context>

<pallas_src>
import functools

import jax
import jax.numpy as jnp
from jax.experimental import pallas as pl
from jax.experimental.pallas import tpu as pltpu

LANE = 128
_F32_SUBLANE = 8


def _hard_update_kernel(x_ref, spike_ref, o_ref, *, value):
    x = x_ref[...]
    s = spike_ref[...].astype(x.dtype)  # narrow spike upcast on the VPU (hidden under DMA)
    # out = spike * value + (1 - spike) * x  ==  x + spike * (value - x)
    # (exact for spike in {0, 1}; ~1 ulp reassociation otherwise)
    o_ref[...] = x + s * (value - x)


def _choose_width(n: int) -> int:
    """Widest lane-dense width (multiple of 128) dividing n. n must be a 128-multiple."""
    for w in (2048, 1024, 512, 256, 128):
        if n % w == 0:
            return w
    raise AssertionError("n must be a multiple of 128 here")


def _target_bytes_per_operand() -> int:
    """Per-f32-operand block-size target, by TPU generation."""
    try:
        kind = jax.devices()[0].device_kind.lower()
    except Exception:  # pragma: no cover - defensive
        kind = ""
    if "v7" in kind or "7x" in kind:
        # v7x: ~3.2 TB/s HBM -> bigger blocks amortize the ~0.35us/step overhead.
        return 4 * 1024 * 1024
    if "v6" in kind:
        return 3 * 1024 * 1024
    # v5e (and older / unknown): 16 MiB default scoped VMEM -> stay conservative.
    return 2 * 1024 * 1024


def _run_kernel(x_flat, s_flat, value: float, inplace: bool):
    """x_flat/s_flat are flat and their length is a multiple of 128."""
    n = x_flat.size
    dtype = x_flat.dtype
    w = _choose_width(n)
    x2 = x_flat.reshape(-1, w)          # free (bitcast) reshape, no HBM pass
    s2 = s_flat.reshape(-1, w)
    rows = x2.shape[0]

    x_item = dtype.itemsize
    s_item = s_flat.dtype.itemsize
    # Packed-sublane multiple of the narrowest streamed dtype: 8 f32 / 16 bf16 / 32 u8.
    sub = _F32_SUBLANE * max(1, 4 // min(x_item, s_item))

    # Size the block so one grid step streams ~3 * per-operand target bytes.
    per_row_bytes = w * (2 * x_item + s_item)            # x in + out + spike
    target_step_bytes = 3 * _target_bytes_per_operand()
    block_rows = (target_step_bytes // per_row_bytes) // sub * sub
    block_rows = max(sub, block_rows)
    if block_rows >= rows:
        block_rows = rows                                 # full dim -> always legal

    grid = (pl.cdiv(rows, block_rows),)                   # partial last block is masked

    # Double-buffered footprint + headroom for Mosaic scratch; <= 48 MiB (v7x physical = 64 MiB).
    step_bytes = block_rows * per_row_bytes
    vmem_limit = int(min(max(2 * step_bytes + (8 << 20), 16 << 20), 48 << 20))

    kernel = functools.partial(_hard_update_kernel, value=value)
    extra = {"input_output_aliases": {0: 0}} if inplace else {}

    out2 = pl.pallas_call(
        kernel,
        out_shape=jax.ShapeDtypeStruct((rows, w), dtype),
        grid=grid,
        in_specs=[
            pl.BlockSpec((block_rows, w), lambda i: (i, 0)),
            pl.BlockSpec((block_rows, w), lambda i: (i, 0)),
        ],
        out_specs=pl.BlockSpec((block_rows, w), lambda i: (i, 0)),
        compiler_params=pltpu.CompilerParams(
            # NOTE: on v7x, if profiling shows a single TC doing all steps,
            # switch this axis to pltpu.CORE_PARALLEL to split across both TCs.
            dimension_semantics=("parallel",),
            vmem_limit_bytes=vmem_limit,
        ),
        **extra,
    )(x2, s2)
    return out2.reshape(-1)


def hard_update_after_spike(x: jnp.ndarray, spike: jnp.ndarray, value: float,
                            *, inplace: bool = False) -> jnp.ndarray:
    """out = spike * value + (1 - spike) * x, elementwise, any shape.

    spike may be float32/bfloat16/uint8/int8/bool; it is streamed in its native
    dtype (prefer a 1-byte dtype end-to-end to cut HBM bytes ~25%).
    `inplace=True` aliases x's buffer to the output (caller must not reuse x).
    """
    assert x.shape == spike.shape, "x and spike must have the same shape"
    if not jnp.issubdtype(x.dtype, jnp.floating):
        raise TypeError(
            "hard_update_after_spike: x must have a floating dtype "
            f"(got {x.dtype}); integer hard-reset semantics are not supported."
        )
    orig_shape = x.shape
    n = x.size
    value = float(value)

    if n == 0:
        return x

    x_flat = x.reshape(-1)
    s_flat = spike.reshape(-1)

    n_tail = n % LANE
    n_main = n - n_tail

    if n_tail == 0:
        out = _run_kernel(x_flat, s_flat, value, inplace)
        return out.reshape(orig_shape)

    # Ragged element count: 128-aligned prefix through the kernel, tiny XLA tail.
    parts = []
    if n_main > 0:
        parts.append(_run_kernel(x_flat[:n_main], s_flat[:n_main], value, False))
    x_t = x_flat[n_main:]
    s_t = s_flat[n_main:].astype(x.dtype)
    parts.append(x_t + s_t * (value - x_t))
    out = jnp.concatenate(parts) if len(parts) > 1 else parts[0]
    return out.reshape(orig_shape)


if __name__ == "__main__":
    key = jax.random.PRNGKey(0)
    k1, k2, k3, k4 = jax.random.split(key, 4)
    value = 0.5  # reset value (module __init__ arg)

    def ref_fn(x, s, v):
        s = s.astype(jnp.float32)
        return s * v + (1.0 - s) * x.astype(jnp.float32)

    # 1) f32 membrane potential, uint8 spike (1-byte fast path), NCHW.
    B, C, H, W = 2, 4, 16, 16
    x1 = jax.random.normal(k1, (B, C, H, W), dtype=jnp.float32)
    s1 = (jax.random.uniform(k2, (B, C, H, W)) > 0.5).astype(jnp.uint8)
    o1 = jax.block_until_ready(hard_update_after_spike(x1, s1, value))
    assert o1.shape == x1.shape and o1.dtype == x1.dtype
    assert jnp.allclose(o1, ref_fn(x1, s1, value), atol=1e-6, rtol=1e-6)

    # 2) f32 spike (original PyTorch dtype combination).
    s2 = s1.astype(jnp.float32)
    o2 = jax.block_until_ready(hard_update_after_spike(x1, s2, value))
    assert jnp.allclose(o2, ref_fn(x1, s2, value), atol=1e-6, rtol=1e-6)

    # 3) bf16 state + uint8 spike (packed-sublane fast path, half the x bytes).
    x3 = x1.astype(jnp.bfloat16)
    o3 = jax.block_until_ready(hard_update_after_spike(x3, s1, value))
    assert o3.dtype == jnp.bfloat16
    assert jnp.allclose(o3.astype(jnp.float32), ref_fn(x3, s1, value), atol=2e-2, rtol=2e-2)

    # 4) ragged element count (n % 128 != 0): kernel prefix + XLA tail, no padding passes.
    x4 = jax.random.normal(k3, (3, 130), dtype=jnp.float32)
    s4 = (jax.random.uniform(k4, (3, 130)) > 0.5).astype(jnp.uint8)
    o4 = jax.block_until_ready(hard_update_after_spike(x4, s4, value))
    assert o4.shape == x4.shape
    assert jnp.allclose(o4, ref_fn(x4, s4, value), atol=1e-6, rtol=1e-6)

    print("KERNEL_OK")
</pallas_src>

<mosaic_0001>
module attributes {stable_mosaic.version = 11 : i64} {
  func.func @_hard_update_kernel(%arg0: i32, %arg1: memref<1x2048xf32, #tpu.memory_space<vmem>>, %arg2: memref<1x2048xi8, #tpu.memory_space<vmem>>, %arg3: memref<1x2048xf32, #tpu.memory_space<vmem>>) attributes {dimension_semantics = [#tpu.dimension_semantics<parallel>], iteration_bounds = array<i64: 1>, scalar_prefetch = 0 : i64, scratch_operands = 0 : i64, tpu.core_type = #tpu.core_type<tc>, window_params = [{transform_indices = @transform_0, window_bounds = array<i64: 1, 2048>}, {transform_indices = @transform_1, window_bounds = array<i64: 1, 2048>}, {transform_indices = @transform_2, window_bounds = array<i64: 1, 2048>}]} {
    %c0 = arith.constant 0 : index
    %c0_0 = arith.constant 0 : index
    %0 = vector.load %arg1[%c0, %c0_0] : memref<1x2048xf32, #tpu.memory_space<vmem>>, vector<1x2048xf32>
    %c0_1 = arith.constant 0 : index
    %c0_2 = arith.constant 0 : index
    %1 = vector.load %arg2[%c0_1, %c0_2] : memref<1x2048xi8, #tpu.memory_space<vmem>>, vector<1x2048xi8>
    %2 = arith.uitofp %1 : vector<1x2048xi8> to vector<1x2048xf32>
    %cst = arith.constant 5.000000e-01 : f32
    %3 = vector.broadcast %cst : f32 to vector<1x2048xf32>
    %4 = arith.subf %3, %0 : vector<1x2048xf32>
    %5 = arith.mulf %2, %4 : vector<1x2048xf32>
    %6 = arith.addf %0, %5 : vector<1x2048xf32>
    %c0_3 = arith.constant 0 : index
    %c0_4 = arith.constant 0 : index
    %7 = vector.load %arg3[%c0_3, %c0_4] : memref<1x2048xf32, #tpu.memory_space<vmem>>, vector<1x2048xf32>
    tpu.vector_store %arg3[%c0_3, %c0_4], %6 {strides = array<i32>} : memref<1x2048xf32, #tpu.memory_space<vmem>>, vector<1x2048xf32>,
    return
  }
  func.func @transform_0(%arg0: i32) -> (i32, i32) {
    %c0_i32 = arith.constant 0 : i32
    %c0_i32_0 = arith.constant 0 : i32
    return %arg0, %c0_i32 : i32, i32
  }
  func.func @transform_1(%arg0: i32) -> (i32, i32) {
    %c0_i32 = arith.constant 0 : i32
    %c0_i32_0 = arith.constant 0 : i32
    return %arg0, %c0_i32 : i32, i32
  }
  func.func @transform_2(%arg0: i32) -> (i32, i32) {
    %c0_i32 = arith.constant 0 : i32
    %c0_i32_0 = arith.constant 0 : i32
    return %arg0, %c0_i32 : i32, i32
  }
}

</mosaic_0001>

<bundles_post_ra>
// kernel: tpu_custom_call.1
= control target key start
LH: loop header
LB: loop body
LE: loop exit
PB: predicated region body
PF: predicated region fallthrough
CT: control target
= control target key end

     0   :  { %7 = vsyncpa [#allocation3], 0  ;;  %s384_s0 = inlined_call_operand.hbm [shape: f32[1,2048], index: 0, kind: input, shape index: {}]   ;;  %s385_s1 = inlined_call_operand.hbm [shape: u8[1,2048], index: 1, kind: input, shape index: {}]   ;;  %s386_s2 = inlined_call_operand.hbm [shape: f32[1,2048], index: 2, kind: output, shape index: {}]  }
   0x1   :  { %8 = vsyncpa [#allocation6], 0 }
   0x2   :  { %9 = vsyncpa [#allocation4], 0  ;;  %s334_s9 = smov [#allocation2]   ;;  %s335_s11 = smov [#allocation5]  }
   0x3   :  { %s16_s10 = sshll.u32 %s334_s9, 4  ;;  %s26_s12 = sshll.u32 %s335_s11, 4  ;;  %s17_s10 = int_to_ptr.vmem [resolvable:$true] %s16_s10  ;;  %s27_s12 = int_to_ptr.vmem [resolvable:$true] %s26_s12 }
   0x4   :  { %s276_s13 = scalar_lea.vmem %s17_s10, 256  ;;  %p281_p1 = scmp.lt.s32.totalorder %s17_s10, %s17_s10 }
   0x5   :  { %p277_p0 = scmp.ne.s32.totalorder %s17_s10, %s276_s13  ;;  %p282_p2 = scmp.lt.s32.totalorder %s276_s13, %s276_s13 }
   0x7   :  { %p283_p3 = por %p282_p2, %p281_p1 }
   0x9   :  { %p284_p4 = pnand %p283_p3, %p277_p0 }
   0xb   :  { %287 = shalt.err (!%p284_p4)
}
   0xc   :  { %19 = dma.hbm_to_vmem [thread:$0]  %s384_s0, 256, %s17_s10, [#allocation3]  }
   0xd   :  { %s296_s16 = scalar_lea.vmem %s27_s12, 256  ;;  %p301_p6 = scmp.lt.s32.totalorder %s27_s12, %s27_s12 }
   0xe   :  { %p297_p5 = scmp.ne.s32.totalorder %s27_s12, %s296_s16  ;;  %p302_p7 = scmp.lt.s32.totalorder %s296_s16, %s296_s16 }
  0x10   :  { %p303_p8 = por %p302_p7, %p301_p6 }
  0x12   :  { %p304_p9 = pnand %p303_p8, %p297_p5 }
  0x14   :  { %307 = shalt.err (!%p304_p9)
}
  0x15   :  { %29 = dma.hbm_to_vmem [thread:$0]  %s385_s1, 256, %s27_s12, [#allocation6]  }
  0x16   :  { %328 = dma.done.wait [#allocation3], 256  }
  0x17   :  { %329 = vsyncadd [#allocation3], 4294967040 }
  0x18   :  { %330 = dma.done.wait [#allocation6], 256  }
  0x19   :  { %331 = vsyncadd [#allocation6], 4294967040  ;;  %v71_v0 = vlaneseq  ;;  %v336_v1 = vmov 286326784   ;;  %v337_v3 = vmov 858989090   ;;  %v363_v18 = vld [vmem:[#allocation2] sm:$0xff] }
  0x1a   :  { %v69_v2 = vunpack.c.l.s4 %v336_v1  ;;  %v76_v4 = vunpack.c.l.s4 %v337_v3  ;;  %v338_v6 = vmov 1431651396   ;;  %v339_v8 = vmov 2004313702   ;;  %v38_v19 = vld [vmem:[#allocation5] sm:$0xff]  ;;  %v39_v28 = vld [vmem:[#allocation5 + $0x8] sm:$0xff] }
  0x1b   :  { %v72_v5 = vshrl.u32 %v71_v0, 7  ;;  %v83_v7 = vunpack.c.l.s4 %v338_v6  ;;  %v90_v9 = vunpack.c.l.s4 %v339_v8  ;;  %v340_v12 = vmov 1966171168   ;;  %v37_v53 = vld [vmem:[#allocation2 + $0x8] sm:$0xff]  ;;  %s341_s0 = smov [#allocation7]  }
  0x1c   :  { %v70_v10 = vunpack.c.0.s8 %v69_v2  ;;  %v77_v11 = vunpack.c.0.s8 %v76_v4  ;;  %v149_v13 = vunpack.c.l.s4 %v340_v12  ;;  %v40_v24 = vunpack.c.0.s8 %v38_v19  ;;  %s250_s1 = sshll.u32 %s341_s0, 4  ;;  %s251_s1 = int_to_ptr.vmem [resolvable:$true] %s250_s1 }
  0x1d   :  { %v84_v14 = vunpack.c.0.s8 %v83_v7  ;;  %v91_v15 = vunpack.c.0.s8 %v90_v9  ;;  %v41_v25 = vunpack.c.1.s8 %v38_v19  ;;  %v42_v26 = vunpack.c.2.s8 %v38_v19  ;;  %s308_s19 = scalar_lea.vmem %s251_s1, 256  ;;  %p313_p11 = scmp.lt.s32.totalorder %s251_s1, %s251_s1 }
  0x1e   :  { %v150_v16 = vunpack.c.0.s8 %v149_v13  ;;  %v73_v17 = vsub.s32 %v70_v10, %v72_v5  ;;  %v80_v20 = vsub.s32 %v77_v11, %v72_v5  ;;  %v43_v27 = vunpack.c.3.s8 %v38_v19  ;;  %p309_p10 = scmp.ne.s32.totalorder %s251_s1, %s308_s19  ;;  %p314_p12 = scmp.lt.s32.totalorder %s308_s19, %s308_s19 }
  0x1f   :  { %v87_v21 = vsub.s32 %v84_v14, %v72_v5  ;;  %v94_v22 = vsub.s32 %v91_v15, %v72_v5  ;;  %v64_v29 = vsub.f32 0.5, %v363_v18  ;;  %v44_v30 = vunpack.c.0.s8 %v39_v28 }
  0x20   :  { %v365_v23 = vsub.s32 %v150_v16, %v72_v5  ;;  %v45_v31 = vunpack.c.1.s8 %v39_v28  ;;  %v46_v32 = vunpack.c.2.s8 %v39_v28  ;;  %v48_v33 = vand.u32 255, %v40_v24  ;;  %p315_p13 = por %p314_p12, %p313_p11 }
  0x21   :  { %v49_v34 = vand.u32 255, %v41_v25  ;;  %v50_v35 = vand.u32 255, %v42_v26  ;;  %v51_v36 = vand.u32 255, %v43_v27  ;;  %v74_v37 = vrot.slane %v64_v29, %v73_v17 }
  0x22   :  { %v81_v38 = vrot.slane %v64_v29, %v80_v20  ;;  %v88_v39 = vrot.slane %v64_v29, %v87_v21  ;;  %v95_v40 = vrot.slane %v64_v29, %v94_v22  ;;  %v56_v41 = vcvt.s32.f32 %v48_v33  ;;  %p316_p0 = pnand %p315_p13, %p309_p10 }
  0x23   :  { %v57_v42 = vcvt.s32.f32 %v49_v34  ;;  %v58_v43 = vcvt.s32.f32 %v50_v35  ;;  %v59_v44 = vcvt.s32.f32 %v51_v36  ;;  %v47_v45 = vunpack.c.3.s8 %v39_v28 }
  0x24   :  { %v52_v46 = vand.u32 255, %v44_v30  ;;  %v53_v47 = vand.u32 255, %v45_v31  ;;  %v54_v48 = vand.u32 255, %v46_v32  ;;  %v132_v49 = vmul.f32 %v74_v37, %v56_v41 }
  0x25   :  { %v133_v50 = vmul.f32 %v81_v38, %v57_v42  ;;  %v134_v51 = vmul.f32 %v88_v39, %v58_v43  ;;  %v135_v52 = vmul.f32 %v95_v40, %v59_v44  ;;  %v55_v54 = vand.u32 255, %v47_v45 }
  0x26   :  { %v60_v55 = vcvt.s32.f32 %v52_v46  ;;  %v154_v56 = vrot.slane %v132_v49, %v365_v23  ;;  %v61_v60 = vcvt.s32.f32 %v53_v47  ;;  %v62_v61 = vcvt.s32.f32 %v54_v48 }
  0x27   :  { %v161_v57 = vrot.slane %v133_v50, %v365_v23  ;;  %v168_v58 = vrot.slane %v134_v51, %v365_v23  ;;  %v175_v59 = vrot.slane %v135_v52, %v365_v23  ;;  %v63_v62 = vcvt.s32.f32 %v55_v54 }
  0x28   :  { %v65_v63 = vsub.f32 0.5, %v37_v53 }
  0x29   :  { %v176_v0 = vcombine.low %v154_v56, %v161_v57  ;;  %v177_v1 = vcombine.low %v168_v58, %v175_v59 }
  0x2a   :  { %v102_v2 = vrot.slane %v65_v63, %v73_v17  ;;  %v109_v3 = vrot.slane %v65_v63, %v80_v20  ;;  %v116_v4 = vrot.slane %v65_v63, %v87_v21  ;;  %v123_v5 = vrot.slane %v65_v63, %v94_v22 }
  0x2b   :  { %v184_v6 = vrot.slane %v176_v0, %v365_v23  ;;  %v191_v7 = vrot.slane %v177_v1, %v365_v23 }
  0x2c   :  { %v136_v8 = vmul.f32 %v102_v2, %v60_v55  ;;  %v137_v9 = vmul.f32 %v109_v3, %v61_v60  ;;  %v138_v10 = vmul.f32 %v116_v4, %v62_v61  ;;  %v139_v11 = vmul.f32 %v123_v5, %v63_v62 }
  0x2d   :  { %v192_v12 = vcombine.low %v184_v6, %v191_v7 }
  0x2e   :  { %v199_v13 = vrot.slane %v136_v8, %v365_v23  ;;  %v206_v14 = vrot.slane %v137_v9, %v365_v23  ;;  %v213_v15 = vrot.slane %v138_v10, %v365_v23  ;;  %v220_v16 = vrot.slane %v139_v11, %v365_v23 }
  0x2f   :  { %v240_v17 = vadd.f32 %v192_v12, %v363_v18 }
  0x30   :  { %v221_v19 = vcombine.low %v199_v13, %v206_v14  ;;  %v222_v20 = vcombine.low %v213_v15, %v220_v16 }
  0x31   :  { %242 = vst [vmem:[#allocation7] sm:$0xff] %v240_v17 }
  0x32   :  { %v229_v21 = vrot.slane %v221_v19, %v365_v23  ;;  %v236_v22 = vrot.slane %v222_v20, %v365_v23 }
  0x34   :  { %v237_v24 = vcombine.low %v229_v21, %v236_v22 }
  0x36   :  { %v241_v25 = vadd.f32 %v237_v24, %v37_v53 }
  0x38   :  { %243 = vst [vmem:[#allocation7 + $0x8] sm:$0xff] %v241_v25 }
  0x39   :  { %319 = shalt.err (!%p316_p0)
}
  0x3a   :  { %253 = dma.vmem_to_hbm [thread:$0]  %s251_s1, 256, %s386_s2, [#allocation4]  }
  0x3b   :  { %332 = dma.done.wait [#allocation4], 256  }
  0x3c   :  { %333 = vsyncadd [#allocation4], 4294967040 }
  0x3d   :  { %257 = vsyncpa [#allocation3], 1 }
  0x3e   :  { %258 = vsyncpa [#allocation6], 1 }
  0x3f   :  { %259 = vsyncpa [#allocation4], 1 }

</bundles_post_ra>
